<compile_context>
chip_gen: v7x
topology: tpu7x:2x2x1
jax: 0.10.0
libtpu: 0.0.40
codegen_flags: <defaults>
</compile_context>

<pallas_src>
import jax
import jax.numpy as jnp
from jax import lax
from jax.experimental import pallas as pl
from jax.experimental.pallas import tpu as pltpu

_LANE = 128
_SUBLANE = 8


def _round_up(x: int, m: int) -> int:
    return ((x + m - 1) // m) * m


def _normalize_rows(zf: jax.Array) -> jax.Array:
    # Matches F.normalize(z, dim=1, eps=1e-12):
    #   1 / max(||z||, 1e-12) == rsqrt(max(||z||^2, 1e-24))   (rsqrt -> EUP, no divide)
    sq = jnp.sum(zf * zf, axis=1, keepdims=True)
    return zf * lax.rsqrt(jnp.maximum(sq, 1e-24))


def _vmem_policy():
    """(tile budget, vmem_limit cap, prefer-even-grid) chosen per TPU generation."""
    budget, limit_cap, prefer_even = 40 << 20, 48 << 20, True   # v7x-safe defaults (64 MiB/core)
    try:
        info = pltpu.get_tpu_info()
        cap = getattr(info, "vmem_capacity_bytes", None)
        if cap is not None and cap >= (96 << 20):               # v5e / v6e: 128 MiB physical
            budget, limit_cap, prefer_even = 96 << 20, 100 << 20, False
    except Exception:
        pass
    return budget, limit_cap, prefer_even


def _vmem_estimate(tm: int, d_pad: int, n_kpad: int, chunk: int, op_bytes: int) -> int:
    """Rough per-step VMEM working set in bytes (conservative)."""
    f32 = 4
    keys = d_pad * n_kpad * op_bytes          # resident zn^T, SINGLE buffer (Buffered(1))
    qtile = 2 * tm * d_pad * op_bytes         # query row tile, double-buffered
    out = 2 * _SUBLANE * _LANE * f32          # per-tile partial-sum block
    temps = 6 * tm * chunk * f32              # per-chunk sim / iota / exp working set
    return keys + qtile + out + temps


def _pick_tile_rows(n_rows: int, d_pad: int, n_kpad: int, chunk: int, op_bytes: int,
                    max_rows: int, budget: int, prefer_even_grid: bool) -> int:
    tm = min(_round_up(max(max_rows, _SUBLANE), _SUBLANE), _round_up(n_rows, _SUBLANE))
    while tm > _SUBLANE and _vmem_estimate(tm, d_pad, n_kpad, chunk, op_bytes) > budget:
        tm -= _SUBLANE
    if _vmem_estimate(tm, d_pad, n_kpad, chunk, op_bytes) > budget:
        # TODO(synk): stream zn^T chunks from HBM (flash-style column grid axis) once the
        # resident key matrix alone no longer fits the per-core VMEM budget.
        raise NotImplementedError(
            f"resident key matrix ({d_pad}x{n_kpad}, {op_bytes}B/elt) exceeds VMEM budget")
    if prefer_even_grid:
        grid = -(-n_rows // tm)
        if grid > 1 and grid % 2 == 1:
            tm_even = _round_up(-(-n_rows // (grid + 1)), _SUBLANE)
            if _SUBLANE <= tm_even < tm and (-(-n_rows // tm_even)) % 2 == 0:
                tm = tm_even
    return tm


def _make_ntxent_kernel(n: int, half_b: int, tile_rows: int, chunk: int, num_chunks: int):
    def kernel(q_ref, knT_ref, psum_ref):
        row0 = pl.program_id(0) * tile_rows
        q = q_ref[...]                                            # (TM, Dp), already * 1/T

        # (TM, 1) global row index, its positive-partner column, and the chunk-local
        # column iota (built once, reused by mask + positive extraction).
        local = lax.broadcasted_iota(jnp.int32, (tile_rows, 1), 0)
        row_idx = local + row0
        pos_col = jnp.where(row_idx < half_b, row_idx + half_b, row_idx - half_b)
        col_base = lax.broadcasted_iota(jnp.int32, (tile_rows, chunk), 1)

        def body(c, carry):
            m, l, t = carry
            kT = knT_ref[c]                                       # (Dp, CK) resident keys
            s = jnp.dot(q, kT, preferred_element_type=jnp.float32)  # (TM, CK) on the MXU
            col = col_base + c * chunk
            # Positive logit sim[r, (r+B)%N] lives in exactly one chunk per row.
            t = t + jnp.sum(jnp.where(col == pos_col, s, 0.0), axis=-1, keepdims=True)
            # Mask self-similarity and zero-padded key columns.
            s = jnp.where((col == row_idx) | (col >= n), -jnp.inf, s)
            # Online logsumexp update (no value accumulation needed for a loss).
            m_new = jnp.maximum(m, jnp.max(s, axis=-1, keepdims=True))
            l = l * jnp.exp(m - m_new) + jnp.sum(jnp.exp(s - m_new), axis=-1, keepdims=True)
            return m_new, l, t

        init = (jnp.full((tile_rows, 1), -jnp.inf, jnp.float32),
                jnp.zeros((tile_rows, 1), jnp.float32),
                jnp.zeros((tile_rows, 1), jnp.float32))
        m, l, t = lax.fori_loop(0, num_chunks, body, init, unroll=num_chunks <= 8)

        lse = m + jnp.log(l)
        loss = lse - t                                            # (TM, 1) per-row losses
        tile_sum = jnp.sum(jnp.where(row_idx < n, loss, 0.0))     # mask padded rows
        # Fill the whole (1, 8, 128) block -> single unmasked lane-dense store.
        psum_ref[...] = jnp.full(psum_ref.shape, tile_sum, jnp.float32)

    return kernel


def custom_contrastive_loss(z: jax.Array, temperature: float = 0.07, *,
                            block_rows: int = 256,
                            operand_dtype=jnp.bfloat16) -> jax.Array:
    """Pallas TPU implementation of CustomContrastiveLoss.forward.

    z: (2*B, D) embeddings. Returns a scalar float32 loss.
    `operand_dtype` is the MXU operand dtype (bf16 by default; pass jnp.float32 for
    bit-closer fidelity to the f32 PyTorch reference at lower MXU throughput).
    """
    N, D = z.shape
    assert N % 2 == 0, "z must contain 2*B rows (two views per sample)"
    B = N // 2
    inv_temp = 1.0 / float(temperature)

    # ---- O(N*D) prologue (normalize + temperature fold + padding), done once ----
    zn = _normalize_rows(z.astype(jnp.float32))
    d_pad = _round_up(max(D, _LANE), _LANE)
    n_kpad = _round_up(max(N, _LANE), _LANE)
    if d_pad != D:
        zn = jnp.pad(zn, ((0, 0), (0, d_pad - D)))     # zero pad features: dots unchanged
    op_bytes = jnp.dtype(operand_dtype).itemsize
    q_op = (zn * inv_temp).astype(operand_dtype)       # temperature folded into query side
    k_op = zn.astype(operand_dtype)

    chunk = 512 if n_kpad % 512 == 0 else (256 if n_kpad % 256 == 0 else _LANE)
    num_chunks = n_kpad // chunk

    budget, limit_cap, prefer_even = _vmem_policy()
    tm = _pick_tile_rows(N, d_pad, n_kpad, chunk, op_bytes, block_rows, budget, prefer_even)
    n_rpad = _round_up(N, tm)
    grid = n_rpad // tm

    if n_rpad != N:
        q_op = jnp.pad(q_op, ((0, n_rpad - N), (0, 0)))          # padded query rows = 0
    if n_kpad != N:
        k_op = jnp.pad(k_op, ((0, n_kpad - N), (0, 0)))          # padded key cols = 0
    # Resident keys, pre-transposed and pre-chunked along the column axis: (C, Dp, CK).
    knT = k_op.reshape(num_chunks, chunk, d_pad).transpose(0, 2, 1)

    est = _vmem_estimate(tm, d_pad, n_kpad, chunk, op_bytes)
    vmem_limit = int(min(limit_cap, max(32 << 20, int(1.5 * est))))

    partials = pl.pallas_call(
        _make_ntxent_kernel(n=N, half_b=B, tile_rows=tm, chunk=chunk, num_chunks=num_chunks),
        out_shape=jax.ShapeDtypeStruct((grid, _SUBLANE, _LANE), jnp.float32),
        grid_spec=pltpu.PrefetchScalarGridSpec(
            num_scalar_prefetch=0,
            grid=(grid,),
            in_specs=[
                # query row tile (double-buffered by the default pipeline)
                pl.BlockSpec((tm, d_pad), lambda i: (i, 0)),
                # resident zn^T: constant index_map, single buffer
                pl.BlockSpec((num_chunks, d_pad, chunk), lambda i: (0, 0, 0),
                             pipeline_mode=pl.Buffered(1)),
            ],
            out_specs=pl.BlockSpec((1, _SUBLANE, _LANE), lambda i: (i, 0, 0)),
        ),
        compiler_params=pltpu.CompilerParams(
            dimension_semantics=("parallel",),                   # row tiles are independent
            vmem_limit_bytes=vmem_limit,
        ),
    )(q_op, knT)

    return jnp.sum(partials[:, 0, 0]) / N


def _reference_loss(z, temperature=0.07, operand_dtype=None):
    """Pure-JAX reference. If operand_dtype is given, the similarity matmul operands are
    cast the same way as the kernel's MXU path (precision-matched)."""
    zn = _normalize_rows(z.astype(jnp.float32))
    inv_t = 1.0 / float(temperature)
    if operand_dtype is not None:
        q = (zn * inv_t).astype(operand_dtype).astype(jnp.float32)
        k = zn.astype(operand_dtype).astype(jnp.float32)
        sim = jnp.matmul(q, k.T, precision=lax.Precision.HIGHEST)
    else:
        sim = jnp.matmul(zn, zn.T, precision=lax.Precision.HIGHEST) * inv_t
    N = z.shape[0]
    Bh = N // 2
    sim = jnp.where(jnp.eye(N, dtype=bool), -jnp.inf, sim)
    targets = jnp.concatenate([jnp.arange(Bh, N), jnp.arange(0, Bh)])
    lse = jax.scipy.special.logsumexp(sim, axis=1)
    return jnp.mean(lse - sim[jnp.arange(N), targets])


if __name__ == "__main__":
    key = jax.random.PRNGKey(0)
    Bb, D = 8, 32                      # batch of 8 samples -> N = 2*B = 16 embeddings
    z = jax.random.normal(key, (2 * Bb, D), dtype=jnp.float32)

    # Default (bf16 MXU operands), f32 operands, and the multi-tile path (TM=8 -> grid=2).
    loss_bf16 = jax.block_until_ready(custom_contrastive_loss(z, 0.07))
    loss_f32 = jax.block_until_ready(custom_contrastive_loss(z, 0.07, operand_dtype=jnp.float32))
    loss_tiled = jax.block_until_ready(custom_contrastive_loss(z, 0.07, block_rows=8))

    ref_f32 = jax.block_until_ready(_reference_loss(z, 0.07))
    ref_bf16 = jax.block_until_ready(_reference_loss(z, 0.07, operand_dtype=jnp.bfloat16))

    # f32 operands: should agree closely with the full-f32 reference.
    assert jnp.allclose(loss_f32, ref_f32, rtol=1e-3, atol=1e-3), (loss_f32, ref_f32)
    # bf16 operands: tight check vs the precision-matched reference...
    assert jnp.allclose(loss_bf16, ref_bf16, rtol=2e-3, atol=2e-3), (loss_bf16, ref_bf16)
    assert jnp.allclose(loss_tiled, ref_bf16, rtol=2e-3, atol=2e-3), (loss_tiled, ref_bf16)
    # ...and a loose check vs the full-f32 reference (accepted bf16/f32 trade-off).
    assert jnp.allclose(loss_bf16, ref_f32, rtol=5e-2, atol=5e-2), (loss_bf16, ref_f32)

    # Ragged case: N not a multiple of 8 / 128 exercises row padding + key-column masking.
    z_odd = jax.random.normal(jax.random.PRNGKey(1), (10, 24), dtype=jnp.float32)
    loss_odd = jax.block_until_ready(custom_contrastive_loss(z_odd, 0.1))
    ref_odd = jax.block_until_ready(_reference_loss(z_odd, 0.1, operand_dtype=jnp.bfloat16))
    assert jnp.allclose(loss_odd, ref_odd, rtol=2e-3, atol=2e-3), (loss_odd, ref_odd)

    print("KERNEL_OK")
</pallas_src>

<mosaic_0001>
module attributes {stable_mosaic.version = 11 : i64} {
  func.func @kernel(%arg0: i32, %arg1: memref<16x128xbf16, #tpu.memory_space<vmem>>, %arg2: memref<1x128x128xbf16, #tpu.memory_space<vmem>>, %arg3: memref<1x8x128xf32, #tpu.memory_space<vmem>>) attributes {dimension_semantics = [#tpu.dimension_semantics<parallel>], iteration_bounds = array<i64: 1>, scalar_prefetch = 0 : i64, scratch_operands = 0 : i64, tpu.core_type = #tpu.core_type<tc>, window_params = [{transform_indices = @transform_0, window_bounds = array<i64: 16, 128>}, {pipeline_mode = #tpu.pipeline_mode<synchronous>, transform_indices = @transform_1, window_bounds = array<i64: 1, 128, 128>}, {transform_indices = @transform_2, window_bounds = array<i64: 1, 8, 128>}]} {
    %c16_i32 = arith.constant 16 : i32
    %0 = arith.muli %arg0, %c16_i32 : i32
    %c0 = arith.constant 0 : index
    %c0_0 = arith.constant 0 : index
    %1 = vector.load %arg1[%c0, %c0_0] : memref<16x128xbf16, #tpu.memory_space<vmem>>, vector<16x128xbf16>
    %2 = tpu.iota {dimensions = array<i32: 0>} : vector<16x1xi32>
    %3 = vector.broadcast %0 : i32 to vector<16x1xi32>
    %4 = arith.addi %2, %3 : vector<16x1xi32>
    %c8_i32 = arith.constant 8 : i32
    %5 = vector.broadcast %c8_i32 : i32 to vector<16x1xi32>
    %6 = arith.cmpi slt, %4, %5 : vector<16x1xi32>
    %c8_i32_1 = arith.constant 8 : i32
    %7 = vector.broadcast %c8_i32_1 : i32 to vector<16x1xi32>
    %8 = arith.addi %4, %7 : vector<16x1xi32>
    %c8_i32_2 = arith.constant 8 : i32
    %9 = vector.broadcast %c8_i32_2 : i32 to vector<16x1xi32>
    %10 = arith.subi %4, %9 : vector<16x1xi32>
    %11 = arith.select %6, %8, %10 : vector<16x1xi1>, vector<16x1xi32>
    %12 = tpu.iota {dimensions = array<i32: 1>} : vector<16x128xi32>
    %cst = arith.constant 0xFF800000 : f32
    %13 = vector.broadcast %cst : f32 to vector<16x1xf32>
    %cst_3 = arith.constant 0.000000e+00 : f32
    %14 = vector.broadcast %cst_3 : f32 to vector<16x1xf32>
    %cst_4 = arith.constant 0.000000e+00 : f32
    %15 = vector.broadcast %cst_4 : f32 to vector<16x1xf32>
    %c0_i32 = arith.constant 0 : i32
    %16 = arith.index_cast %c0_i32 : i32 to index
    %c0_5 = arith.constant 0 : index
    %c0_6 = arith.constant 0 : index
    %17 = vector.load %arg2[%16, %c0_5, %c0_6] : memref<1x128x128xbf16, #tpu.memory_space<vmem>>, vector<1x128x128xbf16>
    %18 = vector.shape_cast %17 : vector<1x128x128xbf16> to vector<128x128xbf16>
    %cst_7 = arith.constant dense<0.000000e+00> : vector<16x128xf32>
    %19 = tpu.matmul %1, %18, %cst_7 {dimension_numbers = #tpu.dot_dimension_numbers<[1], [0], [0], [1], [0, 0, 1, 1], [], []>} : vector<16x128xbf16>, vector<128x128xbf16>, vector<16x128xf32> -> vector<16x128xf32>
    %c128_i32 = arith.constant 128 : i32
    %20 = arith.muli %c0_i32, %c128_i32 : i32
    %21 = vector.broadcast %20 : i32 to vector<16x128xi32>
    %22 = arith.addi %12, %21 : vector<16x128xi32>
    %23 = vector.broadcast %11 : vector<16x1xi32> to vector<16x128xi32>
    %24 = arith.cmpi eq, %22, %23 : vector<16x128xi32>
    %cst_8 = arith.constant 0.000000e+00 : f32
    %25 = vector.broadcast %cst_8 : f32 to vector<16x128xf32>
    %26 = arith.select %24, %19, %25 : vector<16x128xi1>, vector<16x128xf32>
    %cst_9 = arith.constant dense<0.000000e+00> : vector<16xf32>
    %27 = vector.multi_reduction <add>, %26, %cst_9 [1] : vector<16x128xf32> to vector<16xf32>
    %28 = vector.shape_cast %27 : vector<16xf32> to vector<16x1xf32>
    %29 = arith.addf %15, %28 : vector<16x1xf32>
    %30 = vector.broadcast %4 : vector<16x1xi32> to vector<16x128xi32>
    %31 = arith.cmpi eq, %22, %30 : vector<16x128xi32>
    %c16_i32_10 = arith.constant 16 : i32
    %32 = vector.broadcast %c16_i32_10 : i32 to vector<16x128xi32>
    %33 = arith.cmpi sge, %22, %32 : vector<16x128xi32>
    %34 = arith.ori %31, %33 : vector<16x128xi1>
    %cst_11 = arith.constant 0xFF800000 : f32
    %35 = vector.broadcast %cst_11 : f32 to vector<16x128xf32>
    %36 = arith.select %34, %35, %19 : vector<16x128xi1>, vector<16x128xf32>
    %cst_12 = arith.constant dense<0xFF800000> : vector<16xf32>
    %37 = vector.multi_reduction <maximumf>, %36, %cst_12 [1] : vector<16x128xf32> to vector<16xf32>
    %38 = vector.shape_cast %37 : vector<16xf32> to vector<16x1xf32>
    %39 = arith.maximumf %13, %38 : vector<16x1xf32>
    %40 = arith.subf %13, %39 : vector<16x1xf32>
    %41 = math.exp %40 : vector<16x1xf32>
    %42 = arith.mulf %14, %41 : vector<16x1xf32>
    %43 = vector.broadcast %39 : vector<16x1xf32> to vector<16x128xf32>
    %44 = arith.subf %36, %43 : vector<16x128xf32>
    %45 = math.exp %44 : vector<16x128xf32>
    %cst_13 = arith.constant dense<0.000000e+00> : vector<16xf32>
    %46 = vector.multi_reduction <add>, %45, %cst_13 [1] : vector<16x128xf32> to vector<16xf32>
    %47 = vector.shape_cast %46 : vector<16xf32> to vector<16x1xf32>
    %48 = arith.addf %42, %47 : vector<16x1xf32>
    %c1_i32 = arith.constant 1 : i32
    %49 = math.log %48 : vector<16x1xf32>
    %50 = arith.addf %39, %49 : vector<16x1xf32>
    %51 = arith.subf %50, %29 : vector<16x1xf32>
    %c16_i32_14 = arith.constant 16 : i32
    %52 = vector.broadcast %c16_i32_14 : i32 to vector<16x1xi32>
    %53 = arith.cmpi slt, %4, %52 : vector<16x1xi32>
    %cst_15 = arith.constant 0.000000e+00 : f32
    %54 = vector.broadcast %cst_15 : f32 to vector<16x1xf32>
    %55 = arith.select %53, %51, %54 : vector<16x1xi1>, vector<16x1xf32>
    %56 = vector.shape_cast %55 : vector<16x1xf32> to vector<1x16x1xf32>
    %cst_16 = arith.constant dense<0.000000e+00> : vector<1xf32>
    %57 = vector.multi_reduction <add>, %56, %cst_16 [1, 2] : vector<1x16x1xf32> to vector<1xf32>
    %58 = vector.shape_cast %57 : vector<1xf32> to vector<1x1x1xf32>
    %59 = vector.extract %58[0, 0, 0] : f32 from vector<1x1x1xf32>
    %60 = vector.broadcast %59 : f32 to vector<1x8x128xf32>
    %c0_17 = arith.constant 0 : index
    %c0_18 = arith.constant 0 : index
    %c0_19 = arith.constant 0 : index
    %61 = vector.load %arg3[%c0_17, %c0_18, %c0_19] : memref<1x8x128xf32, #tpu.memory_space<vmem>>, vector<1x8x128xf32>
    tpu.vector_store %arg3[%c0_17, %c0_18, %c0_19], %60 {strides = array<i32>} : memref<1x8x128xf32, #tpu.memory_space<vmem>>, vector<1x8x128xf32>,
    return
  }
  func.func @transform_0(%arg0: i32) -> (i32, i32) {
    %c0_i32 = arith.constant 0 : i32
    %c0_i32_0 = arith.constant 0 : i32
    return %arg0, %c0_i32 : i32, i32
  }
  func.func @transform_1(%arg0: i32) -> (i32, i32, i32) {
    %c0_i32 = arith.constant 0 : i32
    %c0_i32_0 = arith.constant 0 : i32
    %c0_i32_1 = arith.constant 0 : i32
    %c0_i32_2 = arith.constant 0 : i32
    return %c0_i32, %c0_i32_0, %c0_i32_1 : i32, i32, i32
  }
  func.func @transform_2(%arg0: i32) -> (i32, i32, i32) {
    %c0_i32 = arith.constant 0 : i32
    %c0_i32_0 = arith.constant 0 : i32
    %c0_i32_1 = arith.constant 0 : i32
    return %arg0, %c0_i32, %c0_i32_0 : i32, i32, i32
  }
}

</mosaic_0001>

<bundles_post_ra>
// kernel: tpu_custom_call.1
= control target key start
LH: loop header
LB: loop body
LE: loop exit
PB: predicated region body
PF: predicated region fallthrough
CT: control target
= control target key end

     0   :  { %7 = vsyncpa [#allocation3], 0  ;;  %s455_s0 = inlined_call_operand.hbm [shape: bf16[16,128], index: 0, kind: input, shape index: {}]   ;;  %s456_s1 = inlined_call_operand.hbm [shape: bf16[1,128,128], index: 1, kind: input, shape index: {}]   ;;  %s457_s2 = inlined_call_operand.hbm [shape: f32[1,8,128], index: 2, kind: output, shape index: {}]  }
   0x1   :  { %8 = vsyncpa [#allocation6], 0 }
   0x2   :  { %9 = vsyncpa [#allocation4], 0  ;;  %s397_s9 = smov [#allocation2]   ;;  %s325_s13 = scalar_lea.hbm %s455_s0, 128 }
   0x3   :  { %s15_s10 = sshll.u32 %s397_s9, 4  ;;  %p326_p0 = scmp.ne.s32.totalorder %s455_s0, %s325_s13  ;;  %s16_s10 = int_to_ptr.vmem [resolvable:$true] %s15_s10 }
   0x4   :  { %p329_p1 = scmp.lt.u32.totalorder %s325_s13, %s455_s0 }
   0x6   :  { %p331_p2 = pnand %p329_p1, %p326_p0 }
   0x8   :  { %334 = shalt.err (!%p331_p2)
}
   0x9   :  { %s335_s18 = scalar_lea.vmem %s16_s10, 128  ;;  %p340_p4 = scmp.lt.s32.totalorder %s16_s10, %s16_s10 }
   0xa   :  { %p336_p3 = scmp.ne.s32.totalorder %s16_s10, %s335_s18  ;;  %p341_p5 = scmp.lt.s32.totalorder %s335_s18, %s335_s18 }
   0xc   :  { %p342_p6 = por %p341_p5, %p340_p4 }
   0xe   :  { %p343_p7 = pnand %p342_p6, %p336_p3 }
  0x10   :  { %346 = shalt.err (!%p343_p7)
}
  0x11   :  { %s398_s19 = smov 64   ;;  %s399_s20 = smov 4  }
  0x12   :  { %21 = dma.hbm_to_vmem [thread:$0]  %s455_s0, 128, %s16_s10, [#allocation3], %s398_s19, %s398_s19, %s399_s20  }
  0x13   :  { %s400_s23 = smov [#allocation5]   ;;  %s347_s27 = scalar_lea.hbm %s456_s1, 1024 }
  0x14   :  { %s27_s24 = sshll.u32 %s400_s23, 4  ;;  %p348_p8 = scmp.ne.s32.totalorder %s456_s1, %s347_s27  ;;  %s28_s24 = int_to_ptr.vmem [resolvable:$true] %s27_s24 }
  0x15   :  { %p351_p9 = scmp.lt.u32.totalorder %s347_s27, %s456_s1 }
  0x17   :  { %p353_p10 = pnand %p351_p9, %p348_p8 }
  0x19   :  { %356 = shalt.err (!%p353_p10)
}
  0x1a   :  { %s357_s4 = scalar_lea.vmem %s28_s24, 1024  ;;  %p362_p12 = scmp.lt.s32.totalorder %s28_s24, %s28_s24 }
  0x1b   :  { %p358_p11 = scmp.ne.s32.totalorder %s28_s24, %s357_s4  ;;  %p363_p13 = scmp.lt.s32.totalorder %s357_s4, %s357_s4 }
  0x1d   :  { %p364_p0 = por %p363_p13, %p362_p12 }
  0x1f   :  { %p365_p1 = pnand %p364_p0, %p358_p11 }
  0x21   :  { %368 = shalt.err (!%p365_p1)
}
  0x22   :  { %33 = dma.hbm_to_vmem [thread:$0]  %s456_s1, 1024, %s28_s24, [#allocation6], %s398_s19, %s398_s19, %s399_s20  }
  0x23   :  { %391 = dma.done.wait [#allocation3], 128  }
  0x24   :  { %392 = vsyncadd [#allocation3], 4294967168 }
  0x25   :  { %393 = dma.done.wait [#allocation6], 1024  }
  0x26   :  { %394 = vsyncadd [#allocation6], 4294966272  ;;  %v401_v0 = vmov 0.0   ;;  %vm402_vm0 = vmmov 0   ;;  %v304_v1 = vld [vmem:[#allocation5] sm:$0xff]   ;;  %v305_v2 = vld [vmem:[#allocation5 + $0x8] sm:$0xff]   ;;  %v44_v10 = vlaneseq }
  0x27   :  { %275 = vmatprep.subr.bf16.mxu0 %v401_v0  ;;  %291 = vmatprep.mubr.msk.bf16.mxu0 %vm402_vm0, %v401_v0  ;;  %v306_v3 = vld [vmem:[#allocation5 + $0x10] sm:$0xff]   ;;  %v307_v4 = vld [vmem:[#allocation5 + $0x18] sm:$0xff]   ;;  %v308_v5 = vld [vmem:[#allocation5 + $0x20] sm:$0xff]   ;;  %vm224_vm7 = vcmask 7168   ;;  %s403_s1 = smov [#allocation7]  }
  0x28   :  { %276 = vmatpush3.bf16.msra.mxu0 %v304_v1  ;;  %v309_v6 = vld [vmem:[#allocation5 + $0x28] sm:$0xff]   ;;  %v310_v7 = vld [vmem:[#allocation5 + $0x30] sm:$0xff]   ;;  %v311_v8 = vld [vmem:[#allocation5 + $0x38] sm:$0xff]   ;;  %v45_v11 = vshrl.u32 %v44_v10, 7  ;;  %v59_v13 = vand.u32 127, %v44_v10  ;;  %s245_s6 = sshll.u32 %s403_s1, 4  ;;  %s246_s6 = int_to_ptr.vmem [resolvable:$true] %s245_s6 }
  0x29   :  { %277 = vmatprep.subr.bf16.mxu0 %v401_v0  ;;  %v312_v9 = vld [vmem:[#allocation2] sm:$0xff]   ;;  %s369_s8 = scalar_lea.vmem %s246_s6, 128  ;;  %p374_p3 = scmp.lt.s32.totalorder %s246_s6, %s246_s6 }
  0x2a   :  { %v46_v12 = vadd.s32 8, %v45_v11  ;;  %vm181_vm2 = vcmp.eq.s32.totalorder %v59_v13, %v45_v11  ;;  %vm183_vm3 = vcmp.ge.s32.totalorder %v59_v13, 16  ;;  %p370_p2 = scmp.ne.s32.totalorder %s246_s6, %s369_s8  ;;  %p375_p4 = scmp.lt.s32.totalorder %s369_s8, %s369_s8 }
  0x2b   :  { %vm184_vm4 = vmor %vm181_vm2, %vm183_vm3 }
  0x2c   :  { %278 = vmatpush3.bf16.msra.mxu0 %v305_v2  ;;  %v256_v14 = vadd.s32 4294967288, %v46_v12  ;;  %vm171_vm5 = vcmp.eq.s32.totalorder %v59_v13, %v46_v12  ;;  %p376_p5 = por %p375_p4, %p374_p3 }
  0x2d   :  { %279 = vmatprep.subr.bf16.mxu0 %v401_v0  ;;  %vm185_vm6 = vmor %vm171_vm5, %vm183_vm3 }
  0x2e   :  { %vm172_vm1 = vcmp.eq.s32.totalorder %v59_v13, %v256_v14  ;;  %p377_p6 = pnand %p376_p5, %p370_p2 }
  0x30   :  { %280 = vmatpush3.bf16.msra.mxu0 %v306_v3 }
  0x31   :  { %281 = vmatprep.subr.bf16.mxu0 %v401_v0 }
  0x34   :  { %282 = vmatpush3.bf16.msra.mxu0 %v307_v4 }
  0x35   :  { %283 = vmatprep.subr.bf16.mxu0 %v401_v0 }
  0x38   :  { %284 = vmatpush3.bf16.msra.mxu0 %v308_v5 }
  0x39   :  { %285 = vmatprep.subr.bf16.mxu0 %v401_v0 }
  0x3c   :  { %286 = vmatpush3.bf16.msra.mxu0 %v309_v6 }
  0x3d   :  { %287 = vmatprep.subr.bf16.mxu0 %v401_v0 }
  0x40   :  { %288 = vmatpush3.bf16.msra.mxu0 %v310_v7 }
  0x41   :  { %289 = vmatprep.subr.bf16.mxu0 %v401_v0 }
  0x44   :  { %290 = vmatpush3.bf16.msra.mxu0 %v311_v8 }
  0x47   :  { %292 = vmatmul.mubr.bf16.vlgmr.msra.gmra.mrb[0].mxu0 %v312_v9 }
 0x11a   :  { %v164_v15 = vpop.f32.mrb[0].mxu0 }
 0x11b   :  { %v293_v16 = vpop.f32.mrb[1].mxu0  ;;  %v186_v17 = vsel %vm184_vm4, -inf, %v164_v15  ;;  %v173_v22 = vsel %vm171_vm5, %v164_v15, 0.0 }
 0x11c   :  { %188 = vmax.xlane.f32.xlu0 %v186_v17  ;;  %v167_v18 = vpop.f32.mrb[2].mxu0 }
 0x11d   :  { %v294_v19 = vpop.f32.mrb[3].mxu0  ;;  %v174_v20 = vsel %vm172_vm1, %v167_v18, 0.0  ;;  %v187_v21 = vsel %vm185_vm6, -inf, %v167_v18 }
 0x120   :  { %190 = vmax.xlane.f32.xlu0 %v187_v21 }
 0x124   :  { %175 = vadd.xlane.f32.xlu0 %v173_v22 }
 0x1a9   :  { %v189_v23 = vpop.xlane.xlu0 %188 }
 0x1aa   :  { %v200_v24 = vsub.f32 %v186_v17, %v189_v23  ;;  %v192_v31 = vsub.f32 -inf, %v189_v23 }
 0x1ac   :  { %v202_v25 = vmul.f32 1.442695, %v200_v24  ;;  %v194_v32 = vmul.f32 1.442695, %v192_v31 }
 0x1ad   :  { %v191_v26 = vpop.xlane.xlu0 %190 }
 0x1ae   :  { %v201_v27 = vsub.f32 %v187_v21, %v191_v26  ;;  %313 = vpow2.f32 %v202_v25  ;;  %v193_v33 = vsub.f32 -inf, %v191_v26 }
 0x1b0   :  { %v204_v28 = vmul.f32 1.442695, %v201_v27  ;;  %v196_v34 = vmul.f32 1.442695, %v193_v33 }
 0x1b1   :  { %v176_v48 = vpop.xlane.xlu0 %175 }
 0x1b2   :  { %315 = vpow2.f32 %v204_v28 }
 0x1b3   :  { %317 = vpow2.f32 %v194_v32 }
 0x1b4   :  { %319 = vpow2.f32 %v196_v34 }
 0x1b8   :  { %v314_v29 = vpop.eup %313 }
 0x1b9   :  { %206 = vadd.xlane.f32.xlu1 %v314_v29 }
 0x1bc   :  { %v316_v30 = vpop.eup %315 }
 0x1bd   :  { %208 = vadd.xlane.f32.xlu1 %v316_v30  ;;  %v318_v35 = vpop.eup %317 }
 0x1be   :  { %v198_v36 = vmul.f32 0.0, %v318_v35  ;;  %v320_v37 = vpop.eup %319 }
 0x1bf   :  { %v199_v40 = vmul.f32 0.0, %v320_v37 }
 0x1c1   :  { %177 = vadd.xlane.f32.xlu1 %v174_v20 }
 0x246   :  { %v207_v38 = vpop.xlane.xlu1 %206 }
 0x247   :  { %v210_v39 = vadd.f32 %v207_v38, %v198_v36 }
 0x249   :  { %321 = vlog2.f32 %v210_v39 }
 0x24a   :  { %v209_v41 = vpop.xlane.xlu1 %208 }
 0x24b   :  { %v211_v42 = vadd.f32 %v209_v41, %v199_v40 }
 0x24d   :  { %323 = vlog2.f32 %v211_v42 }
 0x24e   :  { %v178_v51 = vpop.xlane.xlu1 %177 }
 0x253   :  { %v322_v43 = vpop.eup %321 }
 0x254   :  { %v213_v44 = vmul.f32 0.6931472, %v322_v43 }
 0x256   :  { %v216_v45 = vadd.f32 %v213_v44, %v189_v23 }
 0x257   :  { %v324_v46 = vpop.eup %323 }
 0x258   :  { %v215_v47 = vmul.f32 0.6931472, %v324_v46  ;;  %v218_v50 = vsub.f32 %v216_v45, %v176_v48 }
 0x25a   :  { %v217_v49 = vadd.f32 %v215_v47, %v191_v26  ;;  %v225_v53 = vsel %vm224_vm7, %v218_v50, 0.0 }
 0x25c   :  { %v219_v52 = vsub.f32 %v217_v49, %v178_v51 }
 0x25e   :  { %v226_v54 = vsel %vm224_vm7, %v219_v52, 0.0 }
 0x25f   :  { %v227_v55 = vadd.f32 %v226_v54, %v225_v53 }
 0x261   :  { %228 = vadd.xlane.f32.xlu0 %v227_v55 }
 0x2ee   :  { %v229_v56 = vpop.xlane.xlu0 %228 }
 0x2ef   :  { %v230_v57 = vrot.slane %v229_v56, 4 }
 0x2f1   :  { %v231_v58 = vadd.f32 %v230_v57, %v229_v56 }
 0x2f3   :  { %v232_v59 = vrot.slane %v231_v58, 2 }
 0x2f5   :  { %v233_v60 = vadd.f32 %v232_v59, %v231_v58 }
 0x2f7   :  { %v234_v61 = vrot.slane %v233_v60, 1 }
 0x2f9   :  { %v235_v62 = vadd.f32 %v234_v61, %v233_v60 }
 0x2fb   :  { %295 = vpush %v235_v62 }
 0x32c   :  { %s296_s7 = spop %295 }
 0x32d   :  { %v237_v63 = vstv %s296_s7 }
 0x32e   :  { %238 = vst [vmem:[#allocation7] sm:$0xff] %v237_v63 }
 0x32f   :  { %380 = shalt.err (!%p377_p6)
}
 0x330   :  { %s381_s11 = scalar_lea.hbm %s457_s2, 128 }
 0x331   :  { %p382_p7 = scmp.ne.s32.totalorder %s457_s2, %s381_s11  ;;  %p385_p8 = scmp.lt.u32.totalorder %s381_s11, %s457_s2 }
 0x333   :  { %p387_p9 = pnand %p385_p8, %p382_p7 }
 0x335   :  { %390 = shalt.err (!%p387_p9)
}
 0x336   :  { %248 = dma.vmem_to_hbm [thread:$0]  %s246_s6, 128, %s457_s2, [#allocation4]  }
 0x337   :  { %395 = dma.done.wait [#allocation4], 128  }
 0x338   :  { %396 = vsyncadd [#allocation4], 4294967168 }
 0x339   :  { %252 = vsyncpa [#allocation3], 1 }
 0x33a   :  { %253 = vsyncpa [#allocation6], 1 }
 0x33b   :  { %254 = vsyncpa [#allocation4], 1 }

</bundles_post_ra>
